<compile_context>
chip_gen: v7x
topology: tpu7x:2x2x1
jax: 0.10.0
libtpu: 0.0.40
codegen_flags: <defaults>
</compile_context>

<pallas_src>
import functools

import jax
import jax.numpy as jnp
from jax.experimental import pallas as pl
from jax.experimental.pallas import tpu as pltpu


def _round_up(v, m):
    return ((v + m - 1) // m) * m


def gating_kernel(x_ref, y_ref, wx_ref, wy_ref, wh_ref, bias_ref, o_ref):
    """One row-tile of the gating layer.

    x/y/o    : (TM, D) f32 tiles.
    wx/wy/wh : (D, D) pre-transposed weights in the matmul dtype (bf16).
    bias     : (3, D) f32 -- rows are [bx + by, bh, gate_bias].
    """
    x = x_ref[...].astype(jnp.float32)
    y = y_ref[...].astype(jnp.float32)
    mm_dtype = wx_ref.dtype

    b = bias_ref[...]
    b_xy = b[0:1, :]   # bx + by
    b_h = b[1:2, :]    # bh
    g_b = b[2:3, :]    # gate bias

    # combined = fc_x(x) + fc_y(y): two K=D dots summed in one f32 accumulator
    # (avoids materializing a (TM, 2D) bf16 concat buffer each step).
    combined = (
        jnp.dot(x.astype(mm_dtype), wx_ref[...], preferred_element_type=jnp.float32)
        + jnp.dot(y.astype(mm_dtype), wy_ref[...], preferred_element_type=jnp.float32)
        + b_xy
    )

    r = jax.nn.sigmoid(combined)
    z = jax.nn.sigmoid(combined - g_b)

    # h = tanh(fc_h(r * x + y))
    h_in = (r * x + y).astype(mm_dtype)
    h = jnp.tanh(
        jnp.dot(h_in, wh_ref[...], preferred_element_type=jnp.float32) + b_h
    )

    # (1 - z) * x + z * h  ==  x + z * (h - x)
    o_ref[...] = (x + z * (h - x)).astype(o_ref.dtype)


def prepare_params(params, matmul_dtype=jnp.bfloat16):
    """One-time weight prep (outside the per-call jit): transpose for row @ W.T,
    cast matmul operands to the MXU dtype, fuse bx+by, pack biases."""
    d = params["wx"].shape[0]
    bias_pack = jnp.stack(
        [
            (params["bx"] + params["by"]).astype(jnp.float32),
            params["bh"].astype(jnp.float32),
            params["gate_bias"].astype(jnp.float32),
        ],
        axis=0,
    ).reshape(3, d)
    return {
        "wx_t": params["wx"].T.astype(matmul_dtype),
        "wy_t": params["wy"].T.astype(matmul_dtype),
        "wh_t": params["wh"].T.astype(matmul_dtype),
        "bias_pack": bias_pack,
    }


@functools.partial(jax.jit, static_argnames=("tm",))
def gating_forward(x, y, prepared, *, tm=1024):
    """x, y: (seq, batch, d_model) f32. Returns (seq, batch, d_model) f32."""
    seq, batch, d = x.shape
    n = seq * batch
    x2 = x.reshape(n, d)
    y2 = y.reshape(n, d)

    wx_t = prepared["wx_t"]
    wy_t = prepared["wy_t"]
    wh_t = prepared["wh_t"]
    bias_pack = prepared["bias_pack"]
    mm_itemsize = jnp.dtype(wx_t.dtype).itemsize

    # ---- tiling: big row tiles, cdiv grid, no host-side padding --------------
    tm_eff = min(_round_up(tm, 8), _round_up(n, 8))
    # Keep at least 2 grid steps (when there is enough work) so the "parallel"
    # row axis can be sharded across v7x's two TensorCores.
    if n > 8 and pl.cdiv(n, tm_eff) < 2:
        tm_eff = max(8, _round_up(pl.cdiv(n, 2), 8))
    grid_m = pl.cdiv(n, tm_eff)

    row_spec = pl.BlockSpec((tm_eff, d), lambda i: (i, 0))
    w_spec = pl.BlockSpec((d, d), lambda i: (0, 0))
    b_spec = pl.BlockSpec((3, d), lambda i: (0, 0))

    # ---- VMEM budget (generation-aware clamp) + cost estimate ----------------
    io_itemsize = jnp.dtype(x.dtype).itemsize
    weight_bytes = 3 * d * d * mm_itemsize + 8 * d * 4          # weights + padded bias tile
    io_bytes = 3 * 2 * tm_eff * d * io_itemsize                 # x, y, out double-buffered
    headroom = 8 * tm_eff * d * 4 + (2 << 20)                   # f32 temps + slack
    need = 2 * weight_bytes + io_bytes + headroom
    try:
        phys = pltpu.get_tpu_info().vmem_capacity_bytes
        cap = int(0.75 * phys)
    except Exception:
        cap = 48 << 20                                           # safe on v7x's 64 MiB
    vmem_limit = int(min(max(need, 16 << 20), cap))

    cost = pl.CostEstimate(
        flops=6 * n * d * d + 10 * n * d,
        transcendentals=3 * n * d,
        bytes_accessed=3 * n * d * io_itemsize + weight_bytes,
    )

    out = pl.pallas_call(
        gating_kernel,
        out_shape=jax.ShapeDtypeStruct((n, d), x.dtype),
        grid_spec=pltpu.PrefetchScalarGridSpec(
            num_scalar_prefetch=0,
            grid=(grid_m,),
            in_specs=[
                row_spec,   # x tile
                row_spec,   # y tile
                w_spec,     # Wx^T
                w_spec,     # Wy^T
                w_spec,     # Wh^T
                b_spec,     # [bx+by ; bh ; gate_bias]
            ],
            out_specs=row_spec,
        ),
        compiler_params=pltpu.CompilerParams(
            dimension_semantics=("parallel",),
            vmem_limit_bytes=vmem_limit,
        ),
        cost_estimate=cost,
    )(x2, y2, wx_t, wy_t, wh_t, bias_pack)

    return out.reshape(seq, batch, d)


def gating_reference(x, y, params, matmul_dtype=jnp.float32):
    """Pure-JAX reference of the PyTorch forward.  `matmul_dtype` mirrors the
    kernel's mixed-precision matmul operands (bf16 operands, f32 accumulate)."""
    def q(v):
        return v.astype(matmul_dtype).astype(jnp.float32)

    def linear(v, w, b):
        return q(v) @ q(w).T + b

    combined = linear(x, params["wx"], params["bx"]) + linear(y, params["wy"], params["by"])
    r = jax.nn.sigmoid(combined)
    z = jax.nn.sigmoid(combined - params["gate_bias"])
    h = jnp.tanh(linear(r * x + y, params["wh"], params["bh"]))
    return (1.0 - z) * x + z * h


def init_params(key, d_model, bias_value):
    ks = jax.random.split(key, 6)
    scale = 1.0 / jnp.sqrt(d_model)
    return {
        "wx": jax.random.uniform(ks[0], (d_model, d_model), jnp.float32, -scale, scale),
        "bx": jax.random.uniform(ks[1], (d_model,), jnp.float32, -scale, scale),
        "wy": jax.random.uniform(ks[2], (d_model, d_model), jnp.float32, -scale, scale),
        "by": jax.random.uniform(ks[3], (d_model,), jnp.float32, -scale, scale),
        "wh": jax.random.uniform(ks[4], (d_model, d_model), jnp.float32, -scale, scale),
        "bh": jax.random.uniform(ks[5], (d_model,), jnp.float32, -scale, scale),
        # nn.Parameter(torch.full((d_model,), bias))
        "gate_bias": jnp.full((d_model,), bias_value, dtype=jnp.float32),
    }


if __name__ == "__main__":
    seq, batch, d_model = 8, 2, 128     # lane-dense feature dim (multiple of 128)
    bias_value = 2.0                    # GTrXL-style default gating bias

    key = jax.random.PRNGKey(0)
    kx, ky, kp = jax.random.split(key, 3)
    x = jax.random.normal(kx, (seq, batch, d_model), dtype=jnp.float32)
    y = jax.random.normal(ky, (seq, batch, d_model), dtype=jnp.float32)
    params = init_params(kp, d_model, bias_value)

    prepared = prepare_params(params)   # one-time weight prep, outside the forward
    out = jax.block_until_ready(gating_forward(x, y, prepared, tm=1024))

    assert out.shape == (seq, batch, d_model)
    # Exact-semantics check against a bf16-mirrored reference.
    ref_bf16 = gating_reference(x, y, params, matmul_dtype=jnp.bfloat16)
    err_bf16 = jnp.max(jnp.abs(out - ref_bf16))
    assert jnp.allclose(out, ref_bf16, atol=2e-3, rtol=2e-3), f"bf16-ref max err = {err_bf16}"
    # Looser check against the true f32 PyTorch semantics (bf16 MXU operands).
    ref_f32 = gating_reference(x, y, params, matmul_dtype=jnp.float32)
    err_f32 = jnp.max(jnp.abs(out - ref_f32))
    assert jnp.allclose(out, ref_f32, atol=3e-2, rtol=3e-2), f"f32-ref max err = {err_f32}"

    print("KERNEL_OK")
</pallas_src>

<mosaic_0001>
module attributes {stable_mosaic.version = 11 : i64} {
  func.func @gating_kernel(%arg0: i32, %arg1: memref<8x128xf32, #tpu.memory_space<vmem>>, %arg2: memref<8x128xf32, #tpu.memory_space<vmem>>, %arg3: memref<128x128xbf16, #tpu.memory_space<vmem>>, %arg4: memref<128x128xbf16, #tpu.memory_space<vmem>>, %arg5: memref<128x128xbf16, #tpu.memory_space<vmem>>, %arg6: memref<3x128xf32, #tpu.memory_space<vmem>>, %arg7: memref<8x128xf32, #tpu.memory_space<vmem>>) attributes {dimension_semantics = [#tpu.dimension_semantics<parallel>], iteration_bounds = array<i64: 2>, scalar_prefetch = 0 : i64, scratch_operands = 0 : i64, tpu.core_type = #tpu.core_type<tc>, window_params = [{transform_indices = @transform_0, window_bounds = array<i64: 8, 128>}, {transform_indices = @transform_1, window_bounds = array<i64: 8, 128>}, {pipeline_mode = #tpu.pipeline_mode<synchronous>, transform_indices = @transform_2, window_bounds = array<i64: 128, 128>}, {pipeline_mode = #tpu.pipeline_mode<synchronous>, transform_indices = @transform_3, window_bounds = array<i64: 128, 128>}, {pipeline_mode = #tpu.pipeline_mode<synchronous>, transform_indices = @transform_4, window_bounds = array<i64: 128, 128>}, {pipeline_mode = #tpu.pipeline_mode<synchronous>, transform_indices = @transform_5, window_bounds = array<i64: 3, 128>}, {transform_indices = @transform_6, window_bounds = array<i64: 8, 128>}]} {
    %c0 = arith.constant 0 : index
    %c0_0 = arith.constant 0 : index
    %0 = vector.load %arg1[%c0, %c0_0] : memref<8x128xf32, #tpu.memory_space<vmem>>, vector<8x128xf32>
    %c0_1 = arith.constant 0 : index
    %c0_2 = arith.constant 0 : index
    %1 = vector.load %arg2[%c0_1, %c0_2] : memref<8x128xf32, #tpu.memory_space<vmem>>, vector<8x128xf32>
    %c0_3 = arith.constant 0 : index
    %c0_4 = arith.constant 0 : index
    %2 = vector.load %arg6[%c0_3, %c0_4] : memref<3x128xf32, #tpu.memory_space<vmem>>, vector<3x128xf32>
    %3 = vector.extract_strided_slice %2 {offsets = [0, 0], sizes = [1, 128], strides = [1, 1]} : vector<3x128xf32> to vector<1x128xf32>
    %4 = vector.extract_strided_slice %2 {offsets = [1, 0], sizes = [1, 128], strides = [1, 1]} : vector<3x128xf32> to vector<1x128xf32>
    %5 = vector.extract_strided_slice %2 {offsets = [2, 0], sizes = [1, 128], strides = [1, 1]} : vector<3x128xf32> to vector<1x128xf32>
    %6 = arith.truncf %0 : vector<8x128xf32> to vector<8x128xbf16>
    %c0_5 = arith.constant 0 : index
    %c0_6 = arith.constant 0 : index
    %7 = vector.load %arg3[%c0_5, %c0_6] : memref<128x128xbf16, #tpu.memory_space<vmem>>, vector<128x128xbf16>
    %cst = arith.constant dense<0.000000e+00> : vector<8x128xf32>
    %8 = tpu.matmul %6, %7, %cst {dimension_numbers = #tpu.dot_dimension_numbers<[1], [0], [0], [1], [0, 0, 1, 1], [], []>} : vector<8x128xbf16>, vector<128x128xbf16>, vector<8x128xf32> -> vector<8x128xf32>
    %9 = arith.truncf %1 : vector<8x128xf32> to vector<8x128xbf16>
    %c0_7 = arith.constant 0 : index
    %c0_8 = arith.constant 0 : index
    %10 = vector.load %arg4[%c0_7, %c0_8] : memref<128x128xbf16, #tpu.memory_space<vmem>>, vector<128x128xbf16>
    %cst_9 = arith.constant dense<0.000000e+00> : vector<8x128xf32>
    %11 = tpu.matmul %9, %10, %cst_9 {dimension_numbers = #tpu.dot_dimension_numbers<[1], [0], [0], [1], [0, 0, 1, 1], [], []>} : vector<8x128xbf16>, vector<128x128xbf16>, vector<8x128xf32> -> vector<8x128xf32>
    %12 = arith.addf %8, %11 : vector<8x128xf32>
    %13 = vector.broadcast %3 : vector<1x128xf32> to vector<8x128xf32>
    %14 = arith.addf %12, %13 : vector<8x128xf32>
    %15 = arith.negf %14 : vector<8x128xf32>
    %16 = math.exp %15 : vector<8x128xf32>
    %cst_10 = arith.constant 1.000000e+00 : f32
    %17 = vector.broadcast %cst_10 : f32 to vector<8x128xf32>
    %18 = arith.addf %17, %16 : vector<8x128xf32>
    %19 = arith.divf %17, %18 : vector<8x128xf32>
    %20 = vector.broadcast %5 : vector<1x128xf32> to vector<8x128xf32>
    %21 = arith.subf %14, %20 : vector<8x128xf32>
    %22 = arith.negf %21 : vector<8x128xf32>
    %23 = math.exp %22 : vector<8x128xf32>
    %cst_11 = arith.constant 1.000000e+00 : f32
    %24 = vector.broadcast %cst_11 : f32 to vector<8x128xf32>
    %25 = arith.addf %24, %23 : vector<8x128xf32>
    %26 = arith.divf %24, %25 : vector<8x128xf32>
    %27 = arith.mulf %19, %0 : vector<8x128xf32>
    %28 = arith.addf %27, %1 : vector<8x128xf32>
    %29 = arith.truncf %28 : vector<8x128xf32> to vector<8x128xbf16>
    %c0_12 = arith.constant 0 : index
    %c0_13 = arith.constant 0 : index
    %30 = vector.load %arg5[%c0_12, %c0_13] : memref<128x128xbf16, #tpu.memory_space<vmem>>, vector<128x128xbf16>
    %cst_14 = arith.constant dense<0.000000e+00> : vector<8x128xf32>
    %31 = tpu.matmul %29, %30, %cst_14 {dimension_numbers = #tpu.dot_dimension_numbers<[1], [0], [0], [1], [0, 0, 1, 1], [], []>} : vector<8x128xbf16>, vector<128x128xbf16>, vector<8x128xf32> -> vector<8x128xf32>
    %32 = vector.broadcast %4 : vector<1x128xf32> to vector<8x128xf32>
    %33 = arith.addf %31, %32 : vector<8x128xf32>
    %34 = math.tanh %33 : vector<8x128xf32>
    %35 = arith.subf %34, %0 : vector<8x128xf32>
    %36 = arith.mulf %26, %35 : vector<8x128xf32>
    %37 = arith.addf %0, %36 : vector<8x128xf32>
    %c0_15 = arith.constant 0 : index
    %c0_16 = arith.constant 0 : index
    %38 = vector.load %arg7[%c0_15, %c0_16] : memref<8x128xf32, #tpu.memory_space<vmem>>, vector<8x128xf32>
    tpu.vector_store %arg7[%c0_15, %c0_16], %37 {strides = array<i32>} : memref<8x128xf32, #tpu.memory_space<vmem>>, vector<8x128xf32>,
    return
  }
  func.func @transform_0(%arg0: i32) -> (i32, i32) {
    %c0_i32 = arith.constant 0 : i32
    %c0_i32_0 = arith.constant 0 : i32
    return %arg0, %c0_i32 : i32, i32
  }
  func.func @transform_1(%arg0: i32) -> (i32, i32) {
    %c0_i32 = arith.constant 0 : i32
    %c0_i32_0 = arith.constant 0 : i32
    return %arg0, %c0_i32 : i32, i32
  }
  func.func @transform_2(%arg0: i32) -> (i32, i32) {
    %c0_i32 = arith.constant 0 : i32
    %c0_i32_0 = arith.constant 0 : i32
    %c0_i32_1 = arith.constant 0 : i32
    return %c0_i32, %c0_i32_0 : i32, i32
  }
  func.func @transform_3(%arg0: i32) -> (i32, i32) {
    %c0_i32 = arith.constant 0 : i32
    %c0_i32_0 = arith.constant 0 : i32
    %c0_i32_1 = arith.constant 0 : i32
    return %c0_i32, %c0_i32_0 : i32, i32
  }
  func.func @transform_4(%arg0: i32) -> (i32, i32) {
    %c0_i32 = arith.constant 0 : i32
    %c0_i32_0 = arith.constant 0 : i32
    %c0_i32_1 = arith.constant 0 : i32
    return %c0_i32, %c0_i32_0 : i32, i32
  }
  func.func @transform_5(%arg0: i32) -> (i32, i32) {
    %c0_i32 = arith.constant 0 : i32
    %c0_i32_0 = arith.constant 0 : i32
    %c0_i32_1 = arith.constant 0 : i32
    return %c0_i32, %c0_i32_0 : i32, i32
  }
  func.func @transform_6(%arg0: i32) -> (i32, i32) {
    %c0_i32 = arith.constant 0 : i32
    %c0_i32_0 = arith.constant 0 : i32
    return %arg0, %c0_i32 : i32, i32
  }
}

</mosaic_0001>

<bundles_post_ra>
// kernel: gating_forward.1
= control target key start
LH: loop header
LB: loop body
LE: loop exit
PB: predicated region body
PF: predicated region fallthrough
CT: control target
= control target key end

     0   :  { %s1708_s0 = inlined_call_operand.hbm [shape: f32[16,128], index: 0, kind: input, shape index: {}]   ;;  %s1709_s1 = inlined_call_operand.hbm [shape: f32[16,128], index: 1, kind: input, shape index: {}]   ;;  %s1710_s2 = inlined_call_operand.hbm [shape: bf16[128,128], index: 2, kind: input, shape index: {}]   ;;  %s1711_s3 = inlined_call_operand.hbm [shape: bf16[128,128], index: 3, kind: input, shape index: {}]   ;;  %s1712_s4 = inlined_call_operand.hbm [shape: bf16[128,128], index: 4, kind: input, shape index: {}]   ;;  %s1713_s5 = inlined_call_operand.vmem [shape: f32[3,128], index: 5, kind: input, shape index: {}]   ;;  %s1714_s6 = inlined_call_operand.hbm [shape: f32[16,128], index: 6, kind: output, shape index: {}]  }
   0x1   :  { %1719 = sst [smem:[#allocation17_spill]] %s1710_s2 }
   0x2   :  { %1720 = sst [smem:[#allocation18_spill]] %s1711_s3 }
   0x3   :  { %1721 = sst [smem:[#allocation19_spill]] %s1712_s4 }
   0x4   :  { %11 = vsyncpa [#allocation3], 0 }
   0x5   :  { %13 = vsyncpa [#allocation3 + $0x1], 0 }
   0x6   :  { %14 = vsyncpa [#allocation6], 0 }
   0x7   :  { %16 = vsyncpa [#allocation6 + $0x1], 0 }
   0x8   :  { %17 = vsyncpa [#allocation9], 0 }
   0x9   :  { %18 = vsyncpa [#allocation4], 0 }
   0xa   :  { %20 = vsyncpa [#allocation4 + $0x1], 0  ;;  %s1357_s21 = smov 0   ;;  %s1359_s22 = smov 0  }
   0xb   :  { %s1361_s23 = smov 0   ;;  %s1363_s24 = smov 0  }
   0xc LB: > { %s1378_s25 = sadd.s32 4294967295, %s1310_s24   ;;  %s834_s26 = sadd.s32 4294967294, %s1310_s24   ;;  %s1310_s24 = sphi %s1363_s24, %s1745_s24   ;;  %s1306_s23 = sphi %s1361_s23, %s1744_s23   ;;  %s1302_s22 = sphi %s1359_s22, %s1743_s22   ;;  %s1298_s21 = sphi %s1357_s21, %s1742_s21  }
   0xd   : > { %p46_p0 = scmp.ne.s32.totalorder %s1302_s22, %s1298_s21  ;;  %p1715_p1 = scmp.eq.s32.totalorder %s1378_s25, 0 }
   0xe   : > { %p186_p3 = scmp.eq.s32.totalorder %s834_s26, 1  ;;  %p835_p5 = scmp.ge.s32.totalorder %s1310_s24, 1 }
   0xf   : > { %p1387_p4 = por %p1715_p1, %p46_p0  ;;  %p193_p7 = scmp.lt.s32.totalorder %s1310_s24, 3 }
  0x10   : > { %p1392_p6 = por %p186_p3, %p46_p0  ;;  %s1312_s30 = smov [#allocation7]  }
  0x11   : > { %s1722_s27 = scalar_select %p1387_p4, 1, 0 }
  0x12   : > { %s1723_s28 = scalar_select %p1392_p6, 1, 0 }
  0x13   : > { %p1397_p8 = pnand %p835_p5, %p193_p7  ;;  %s205_s7 = sshll.u32 %s1312_s30, 4  ;;  %s1401_s7 = int_to_ptr.vmem [resolvable:$true] %s205_s7 }
  0x14   : > { %s1313_s9 = smov [#allocation8]   ;;  %s1314_s11 = smov [#allocation10]  }
  0x15   : > { %s1724_s29 = scalar_select %p1397_p8, 1, 0 }
  0x16   : > { %p986_p9 = pneg %p1397_p8  ;;  %s218_s10 = sshll.u32 %s1313_s9, 4  ;;  %s1412_s10 = int_to_ptr.vmem [resolvable:$true] %s218_s10 }
  0x17   : > { %s1414_s12 = sshll.u32 %s1314_s11, 4  ;;  %s1726_s2 = sld [smem:[#allocation17_spill]]  ;;  %s232_s12 = int_to_ptr.vmem [resolvable:$true] %s1414_s12 }
  0x18   : > { %p1408_p11 = pnand %p986_p9, %p1715_p1 }
  0x1a   : > { %p1424_p13 = pneg %p1408_p11 }
  0x1d   : > { %s1088_s15 = scalar_lea.hbm %s1726_s2, 1024 }
  0x1e   : > { %p1089_p12 = scmp.ne.s32.totalorder %s1726_s2, %s1088_s15  ;;  %p1095_p5 = scmp.lt.u32.totalorder %s1088_s15, %s1726_s2 }
  0x20   : > { %p1091_p0 = pnand %p1424_p13, %p1089_p12 }
  0x22   : > { %p1092_p3 = pneg %p1091_p0 }
  0x24   : > { %p1097_p7 = pnand %p1095_p5, %p1092_p3 }
  0x26   : > { %1100 = shalt.err (!%p1097_p7)
}
  0x27   : > { %s1101_s26 = scalar_lea.vmem %s1401_s7, 1024  ;;  %p1109_p2 = scmp.lt.s32.totalorder %s1401_s7, %s1401_s7 }
  0x28   : > { %p1102_p9 = scmp.ne.s32.totalorder %s1401_s7, %s1101_s26  ;;  %p1110_p6 = scmp.lt.s32.totalorder %s1101_s26, %s1101_s26 }
  0x2a   : > { %p1104_p10 = pnand %p1102_p9, %p1424_p13  ;;  %p1111_p12 = por %p1110_p6, %p1109_p2 }
  0x2c   : > { %p1105_p1 = pneg %p1104_p10 }
  0x2e   : > { %p1112_p0 = pnand %p1111_p12, %p1105_p1 }
  0x30   : > { %1115 = shalt.err (!%p1112_p0)
}
  0x31   : > { %s1315_s30 = smov 64   ;;  %s1316_s9 = smov 4  }
  0x32   : > { %989 = dma.hbm_to_vmem [thread:$0]  (!%p1408_p11), %s1726_s2, 1024, %s1401_s7, [#allocation6], %s1315_s30, %s1315_s30, %s1316_s9  }
  0x33   : > { %s1728_s3 = sld [smem:[#allocation18_spill]] }
  0x39   : > { %s1116_s16 = scalar_lea.hbm %s1728_s3, 1024 }
  0x3a   : > { %p1117_p1 = scmp.ne.s32.totalorder %s1728_s3, %s1116_s16  ;;  %p1123_p10 = scmp.lt.u32.totalorder %s1116_s16, %s1728_s3 }
  0x3c   : > { %p1119_p2 = pnand %p1117_p1, %p1424_p13 }
  0x3e   : > { %p1120_p6 = pneg %p1119_p2 }
  0x40   : > { %p1125_p3 = pnand %p1123_p10, %p1120_p6 }
  0x42   : > { %1128 = shalt.err (!%p1125_p3)
}
  0x43   : > { %s1129_s7 = scalar_lea.vmem %s1412_s10, 1024  ;;  %p1137_p12 = scmp.lt.s32.totalorder %s1412_s10, %s1412_s10 }
  0x44   : > { %p1130_p5 = scmp.ne.s32.totalorder %s1412_s10, %s1129_s7  ;;  %p1138_p0 = scmp.lt.s32.totalorder %s1129_s7, %s1129_s7 }
  0x46   : > { %p1132_p7 = pnand %p1130_p5, %p1424_p13  ;;  %p1139_p1 = por %p1138_p0, %p1137_p12 }
  0x48   : > { %p1133_p9 = pneg %p1132_p7 }
  0x4a   : > { %p1140_p2 = pnand %p1139_p1, %p1133_p9 }
  0x4c   : > { %1143 = shalt.err (!%p1140_p2)
}
  0x4d   : > { %992 = dma.hbm_to_vmem [thread:$0]  (!%p1408_p11), %s1728_s3, 1024, %s1412_s10, [#allocation9], %s1315_s30, %s1315_s30, %s1316_s9  }
  0x4e   : > { %s1729_s4 = sld [smem:[#allocation19_spill]] }
  0x54   : > { %s1144_s16 = scalar_lea.hbm %s1729_s4, 1024 }
  0x55   : > { %p1145_p6 = scmp.ne.s32.totalorder %s1729_s4, %s1144_s16  ;;  %p1151_p5 = scmp.lt.u32.totalorder %s1144_s16, %s1729_s4 }
  0x57   : > { %p1147_p10 = pnand %p1145_p6, %p1424_p13 }
  0x59   : > { %p1148_p3 = pneg %p1147_p10 }
  0x5b   : > { %p1153_p7 = pnand %p1151_p5, %p1148_p3 }
  0x5d   : > { %1156 = shalt.err (!%p1153_p7)
}
  0x5e   : > { %s1157_s7 = scalar_lea.vmem %s232_s12, 1024  ;;  %p1165_p1 = scmp.lt.s32.totalorder %s232_s12, %s232_s12 }
  0x5f   : > { %p1158_p9 = scmp.ne.s32.totalorder %s232_s12, %s1157_s7  ;;  %p1166_p2 = scmp.lt.s32.totalorder %s1157_s7, %s1157_s7 }
  0x61   : > { %p1160_p12 = pnand %p1158_p9, %p1424_p13  ;;  %p1167_p4 = por %p1166_p2, %p1165_p1 }
  0x63   : > { %p1161_p0 = pneg %p1160_p12 }
  0x65   : > { %p1168_p8 = pnand %p1167_p4, %p1161_p0 }
  0x67   : > { %1171 = shalt.err (!%p1168_p8)
}
  0x68   : > { %995 = dma.hbm_to_vmem [thread:$0]  (!%p1408_p11), %s1729_s4, 1024, %s232_s12, [#allocation9], %s1315_s30, %s1315_s30, %s1316_s9  }
  0x69   : > { %s1497_s18 = sadd.s32 1, %s1310_s24   ;;  %s33_s13 = sadd.s32 1, %s1306_s23 }
  0x6a   : > { %s30_s8 = ssub.s32 %s1310_s24, %s1497_s18  ;;  %p40_p8 = scmp.ne.s32.totalorder %s1306_s23, %s1302_s22 }
  0x6b   : > { %p31_p4 = scmp.eq.s32.totalorder %s30_s8, 0  ;;  %p41_p13 = scmp.eq.s32.totalorder %s1310_s24, 0 }
  0x6c   : > { %p1010_p6 = scmp.lt.s32.totalorder %s1310_s24, 2  ;;  %p1730_p3 = scmp.eq.s32.totalorder %s1378_s25, 1 }
  0x6d   : > { %s1507_s14 = scalar_select %p31_p4, %s1306_s23, %s33_s13  }
  0x6e   : > { %p42_p10 = por %p41_p13, %p40_p8  ;;  %p1511_p5 = por %p1730_p3, %p40_p8 }
  0x6f   : > { %s248_s16 = sand.u32 1, %s1306_s23   ;;  %s841_s17 = sshll.u32 %s1310_s24, 7 }
  0x70   : > { %s1731_s15 = scalar_select %p1511_p5, 1, 0 }
  0x71   : > { %s1517_s12 = sshll.u32 %s248_s16, 3  ;;  %s1522_s19 = scalar_lea.hbm %s1708_s0, %s841_s17 }
  0x72   : > { %s252_s20 = scalar_lea.vmem [#allocation2], %s1517_s12  ;;  %p1525_p11 = pnand %p1010_p6, %p42_p10 }
  0x73   : > { %s259_s26 = sshll.u32 %s252_s20, 4  ;;  %s1534_s8 = scalar_lea.hbm %s1709_s1, %s841_s17  ;;  %s1529_s26 = int_to_ptr.vmem [resolvable:$true] %s259_s26 }
  0x74   : > { %s249_s13 = scalar_lea.sflag [#allocation3], %s248_s16  ;;  %s1172_s30 = scalar_lea.hbm %s1522_s19, 128 }
  0x75   : > { %p1173_p7 = scmp.ne.s32.totalorder %s1522_s19, %s1172_s30  ;;  %p1174_p9 = pneg %p1525_p11 }
  0x76   : > { %s1177_s2 = scalar_lea.hbm %s1708_s0, 256  ;;  %p1178_p1 = scmp.lt.u32.totalorder %s1522_s19, %s1708_s0 }
  0x77   : > { %p1175_p12 = pnand %p1174_p9, %p1173_p7  ;;  %p1179_p2 = scmp.lt.u32.totalorder %s1177_s2, %s1172_s30 }
  0x78   : > { %p1181_p8 = scmp.lt.u32.totalorder %s1172_s30, %s1522_s19 }
  0x79   : > { %p1176_p0 = pneg %p1175_p12  ;;  %p1180_p4 = por %p1179_p2, %p1178_p1 }
  0x7b   : > { %p1182_p13 = por %p1181_p8, %p1180_p4 }
  0x7d   : > { %p1183_p6 = pnand %p1182_p13, %p1176_p0 }
  0x7f   : > { %1186 = shalt.err (!%p1183_p6)
}
  0x80   : > { %s1187_s16 = scalar_lea.vmem %s1529_s26, 128  ;;  %s1317_s17 = smov [#allocation2]  }
  0x81   : > { %p1188_p10 = scmp.ne.s32.totalorder %s1529_s26, %s1187_s16  ;;  %s1192_s10 = sshll.u32 %s1317_s17, 4  ;;  %s1193_s10 = int_to_ptr.vmem [resolvable:$false] %s1192_s10 }
  0x82   : > { %s1194_s3 = scalar_lea.vmem %s1193_s10, 256  ;;  %p1195_p12 = scmp.lt.s32.totalorder %s1529_s26, %s1193_s10 }
  0x83   : > { %p1190_p3 = pnand %p1188_p10, %p1174_p9  ;;  %p1196_p1 = scmp.lt.s32.totalorder %s1194_s3, %s1187_s16 }
  0x85   : > { %p1191_p7 = pneg %p1190_p3  ;;  %p1197_p2 = por %p1196_p1, %p1195_p12 }
  0x87   : > { %p1198_p4 = pnand %p1197_p2, %p1191_p7 }
  0x89   : > { %1201 = shalt.err (!%p1198_p4)
}
  0x8a   : > { %999 = dma.hbm_to_vmem [thread:$0]  (!%p1525_p11), %s1522_s19, 128, %s1529_s26, %s249_s13  }
  0x8b   : > { %s266_s2 = sand.u32 1, %s1310_s24   ;;  %s270_s4 = scalar_lea.vmem [#allocation5], %s1517_s12 }
  0x8c   : > { %s277_s11 = sshll.u32 %s270_s4, 4  ;;  %s267_s30 = scalar_lea.sflag [#allocation6], %s266_s2  ;;  %s278_s11 = int_to_ptr.vmem [resolvable:$true] %s277_s11 }
  0x8d   : > { %s1202_s9 = scalar_lea.hbm %s1534_s8, 128  ;;  %s1207_s17 = scalar_lea.hbm %s1709_s1, 256 }
  0x8e   : > { %p1203_p0 = scmp.ne.s32.totalorder %s1534_s8, %s1202_s9  ;;  %p1208_p6 = scmp.lt.u32.totalorder %s1534_s8, %s1709_s1 }
  0x8f   : > { %p1209_p10 = scmp.lt.u32.totalorder %s1207_s17, %s1202_s9  ;;  %p1211_p7 = scmp.lt.u32.totalorder %s1202_s9, %s1534_s8 }
  0x90   : > { %p1205_p8 = pnand %p1203_p0, %p1174_p9 }
  0x91   : > { %p1210_p3 = por %p1209_p10, %p1208_p6 }
  0x92   : > { %p1206_p13 = pneg %p1205_p8 }
  0x93   : > { %p1212_p12 = por %p1211_p7, %p1210_p3 }
  0x95   : > { %p1213_p1 = pnand %p1212_p12, %p1206_p13 }
  0x97   : > { %1216 = shalt.err (!%p1213_p1)
}
  0x98   : > { %s1217_s12 = scalar_lea.vmem %s278_s11, 128  ;;  %s1318_s19 = smov [#allocation5]  }
  0x99   : > { %p1218_p2 = scmp.ne.s32.totalorder %s278_s11, %s1217_s12  ;;  %s1222_s26 = sshll.u32 %s1318_s19, 4  ;;  %s1223_s26 = int_to_ptr.vmem [resolvable:$false] %s1222_s26 }
  0x9a   : > { %s1224_s13 = scalar_lea.vmem %s1223_s26, 256  ;;  %p1225_p8 = scmp.lt.s32.totalorder %s278_s11, %s1223_s26 }
  0x9b   : > { %p1220_p4 = pnand %p1218_p2, %p1174_p9  ;;  %p1226_p5 = scmp.lt.s32.totalorder %s1224_s13, %s1217_s12 }
  0x9d   : > { %p1221_p0 = pneg %p1220_p4  ;;  %p1227_p6 = por %p1226_p5, %p1225_p8 }
  0x9f   : > { %p1228_p10 = pnand %p1227_p6, %p1221_p0 }
  0xa1   : > { %1231 = shalt.err (!%p1228_p10)
}
  0xa2   : > { %1002 = dma.hbm_to_vmem [thread:$0]  (!%p1525_p11), %s1534_s8, 128, %s278_s11, %s267_s30  }
  0xa3   : > { %p1733_p13 = scmp.ne.s32.totalorder %s1724_s29, 0 }
  0xa4   : > { %s1585_s2 = sand.u32 (!%p1733_p13), 1, %s1302_s22   ;;  %p1734_p5 = scmp.ne.s32.totalorder (!%p1733_p13), %s1722_s27, 0 }
  0xa5   : > { %286 = sbr.rel (%p1733_p13) target bundleno = 710 (0x2c6), region = 44  ;;  %s1588_s4 = sshll.u32 (!%p1733_p13), %s1585_s2, 3 }
  0xa6   : > { %s289_s9 = scalar_lea.sflag (!%p1733_p13), [#allocation3], %s1585_s2  ;;  %s292_s20 = scalar_lea.vmem (!%p1733_p13), [#allocation2], %s1588_s4 }
  0xac   : > { %1277 = dma.done.wait (%p1734_p5), %s289_s9, 128  }
  0xad   : > { %1279 = vsyncadd (%p1734_p5), %s289_s9, 4294967168  ;;  %s297_s29 = sand.u32 1, %s1378_s25   ;;  %s301_s8 = scalar_lea.vmem [#allocation5], %s1588_s4 }
  0xae   : > { %s298_s7 = scalar_lea.sflag [#allocation6], %s297_s29 }
  0xaf   : > { %1281 = dma.done.wait (%p1734_p5), %s298_s7, 128  }
  0xb0   : > { %1283 = vsyncadd (%p1734_p5), %s298_s7, 4294967168  ;;  %p1735_p11 = scmp.eq.s32.totalorder %s1378_s25, 0 }
  0xb2   : > { %1285 = dma.done.wait (%p1735_p11), [#allocation6], 1024   ;;  %p1736_p9 = pmov %p1735_p11 }
  0xb4   : > { %1287 = vsyncadd (%p1736_p9), [#allocation6], 4294966272  ;;  %p1737_p3 = pmov %p1736_p9 }
  0xb6   : > { %1289 = dma.done.wait (%p1737_p3), [#allocation9], 2048   ;;  %p1738_p7 = pmov %p1737_p3 }
  0xb7   : > { %v1319_v0 = vmov 0.0   ;;  %vm1320_vm0 = vmmov 0   ;;  %v1054_v1 = vld [vmem:[#allocation8] sm:$0xff]   ;;  %v1056_v3 = vld [vmem:[#allocation8 + $0x8] sm:$0xff]   ;;  %v1058_v5 = vld [vmem:[#allocation8 + $0x10] sm:$0xff]   ;;  %v561_v21 = vlaneseq  ;;  %s878_s30 = sshll.u32 %s1378_s25, 7 }
  0xb8   : > { %1291 = vsyncadd (%p1738_p7), [#allocation9], 4294965248  ;;  %908 = vmatprep.subr.bf16.mxu0 %v1319_v0  ;;  %928 = vmatprep.subr.bf16.mxu1 %v1319_v0  ;;  %v1055_v2 = vld [vmem:[#allocation7] sm:$0xff]   ;;  %v1057_v4 = vld [vmem:[#allocation7 + $0x8] sm:$0xff]   ;;  %s346_s16 = scalar_lea.vmem [#allocation11], %s1588_s4  ;;  %s1664_s12 = scalar_lea.hbm %s1714_s6, %s878_s30 }
  0xb9   : > { %924 = vmatprep.mubr.msk.bf16.mxu0 %vm1320_vm0, %v1319_v0  ;;  %944 = vmatprep.mubr.msk.bf16.mxu1 %vm1320_vm0, %v1319_v0  ;;  %v1059_v6 = vld [vmem:[#allocation7 + $0x10] sm:$0xff]   ;;  %v1060_v7 = vld [vmem:[#allocation8 + $0x18] sm:$0xff]   ;;  %v1062_v9 = vld [vmem:[#allocation8 + $0x20] sm:$0xff]   ;;  %v562_v22 = vshrl.u32 %v561_v21, 7  ;;  %s713_s17 = sshll.u32 %s346_s16, 4  ;;  %s700_s19 = scalar_lea.sflag [#allocation4], %s1585_s2  ;;  %s1666_s17 = int_to_ptr.vmem [resolvable:$true] %s713_s17 }
  0xba   : > { %909 = vmatpush3.bf16.msra.mxu0 %v1054_v1  ;;  %929 = vmatpush3.bf16.msra.mxu1 %v1055_v2  ;;  %v1061_v8 = vld [vmem:[#allocation7 + $0x18] sm:$0xff]   ;;  %v1063_v10 = vld [vmem:[#allocation7 + $0x20] sm:$0xff]   ;;  %v1064_v11 = vld [vmem:[#allocation8 + $0x28] sm:$0xff]   ;;  %s1232_s26 = scalar_lea.vmem %s1666_s17, 128  ;;  %p1739_p1 = scmp.ne.s32.totalorder %s1731_s15, 0 }
  0xbb   : > { %910 = vmatprep.subr.bf16.mxu0 %v1319_v0  ;;  %930 = vmatprep.subr.bf16.mxu1 %v1319_v0  ;;  %v1065_v12 = vld [vmem:[#allocation7 + $0x28] sm:$0xff]   ;;  %v1066_v13 = vld [vmem:[#allocation8 + $0x30] sm:$0xff]   ;;  %v1068_v15 = vld [vmem:[#allocation8 + $0x38] sm:$0xff]   ;;  %v574_v23 = vsub.s32 2, %v562_v22  ;;  %v604_v34 = vsub.s32 1, %v562_v22  ;;  %v563_v36 = vsub.s32 0, %v562_v22  ;;  %p1233_p12 = scmp.ne.s32.totalorder %s1666_s17, %s1232_s26 }
  0xbc   : > { %v1067_v14 = vld [vmem:[#allocation7 + $0x30] sm:$0xff]   ;;  %v1069_v17 = vld [vmem:[#allocation7 + $0x38] sm:$0xff]   ;;  %v1635_v18 = vld [vmem:[%s292_s20] sm:$0xff]  ;;  %s1321_s25 = smov [#allocation11]  }
  0xbd   : > { %v1630_v16 = vld [vmem:[%s301_s8] sm:$0xff]  ;;  %v351_v20 = vpack.c.bf16 %v1635_v18, %v1635_v18  ;;  %v350_v24 = vld [vmem:[%s1713_s5] sm:$0x7]  ;;  %v1071_v27 = vld [vmem:[#allocation10 + $0x8] sm:$0xff]   ;;  %p1234_p2 = pnand %p1233_p12, %p1739_p1  ;;  %s1236_s13 = sshll.u32 %s1321_s25, 4  ;;  %s1237_s13 = int_to_ptr.vmem [resolvable:$false] %s1236_s13 }
  0xbe   : > { %911 = vmatpush3.bf16.msra.mxu0 %v1056_v3  ;;  %931 = vmatpush3.bf16.msra.mxu1 %v1057_v4  ;;  %v368_v19 = vpack.c.bf16 %v1630_v16, %v1630_v16  ;;  %v575_v25 = vrot.slane %v350_v24, %v574_v23  ;;  %v1070_v26 = vld [vmem:[#allocation10] sm:$0xff]   ;;  %v1072_v28 = vld [vmem:[#allocation10 + $0x10] sm:$0xff]   ;;  %v1073_v29 = vld [vmem:[#allocation10 + $0x18] sm:$0xff]   ;;  %v605_v35 = vrot.slane %v350_v24, %v604_v34  ;;  %s1238_s4 = scalar_lea.vmem %s1237_s13, 256  ;;  %p1239_p0 = scmp.lt.s32.totalorder %s1666_s17, %s1237_s13 }
  0xbf   : > { %912 = vmatprep.subr.bf16.mxu0 %v1319_v0  ;;  %932 = vmatprep.subr.bf16.mxu1 %v1319_v0  ;;  %v1074_v30 = vld [vmem:[#allocation10 + $0x20] sm:$0xff]   ;;  %v1075_v31 = vld [vmem:[#allocation10 + $0x28] sm:$0xff]   ;;  %v1076_v32 = vld [vmem:[#allocation10 + $0x30] sm:$0xff]   ;;  %v564_v38 = vrot.slane %v350_v24, %v563_v36  ;;  %p1235_p4 = pneg %p1234_p2  ;;  %p1240_p8 = scmp.lt.s32.totalorder %s1238_s4, %s1232_s26 }
  0xc0   : > { %v1077_v33 = vld [vmem:[#allocation10 + $0x38] sm:$0xff]  }
  0xc1   : > { %p1241_p6 = por %p1240_p8, %p1239_p0 }
  0xc2   : > { %913 = vmatpush3.bf16.msra.mxu0 %v1058_v5  ;;  %933 = vmatpush3.bf16.msra.mxu1 %v1059_v6 }
  0xc3   : > { %914 = vmatprep.subr.bf16.mxu0 %v1319_v0  ;;  %934 = vmatprep.subr.bf16.mxu1 %v1319_v0  ;;  %p1242_p10 = pnand %p1241_p6, %p1235_p4 }
  0xc6   : > { %915 = vmatpush3.bf16.msra.mxu0 %v1060_v7  ;;  %935 = vmatpush3.bf16.msra.mxu1 %v1061_v8 }
  0xc7   : > { %916 = vmatprep.subr.bf16.mxu0 %v1319_v0  ;;  %936 = vmatprep.subr.bf16.mxu1 %v1319_v0 }
  0xca   : > { %917 = vmatpush3.bf16.msra.mxu0 %v1062_v9  ;;  %937 = vmatpush3.bf16.msra.mxu1 %v1063_v10 }
  0xcb   : > { %918 = vmatprep.subr.bf16.mxu0 %v1319_v0  ;;  %938 = vmatprep.subr.bf16.mxu1 %v1319_v0 }
  0xce   : > { %919 = vmatpush3.bf16.msra.mxu0 %v1064_v11  ;;  %939 = vmatpush3.bf16.msra.mxu1 %v1065_v12 }
  0xcf   : > { %920 = vmatprep.subr.bf16.mxu0 %v1319_v0  ;;  %940 = vmatprep.subr.bf16.mxu1 %v1319_v0 }
  0xd2   : > { %921 = vmatpush3.bf16.msra.mxu0 %v1066_v13  ;;  %941 = vmatpush3.bf16.msra.mxu1 %v1067_v14 }
  0xd3   : > { %922 = vmatprep.subr.bf16.mxu0 %v1319_v0  ;;  %942 = vmatprep.subr.bf16.mxu1 %v1319_v0 }
  0xd6   : > { %923 = vmatpush3.bf16.msra.mxu0 %v1068_v15  ;;  %943 = vmatpush3.bf16.msra.mxu1 %v1069_v17 }
  0xd7   : > { %948 = vmatprep.subr.bf16.mxu0 %v1319_v0 }
  0xd9   : > { %925 = vmatmul.mubr.bf16.vlgmr.msra.gmra.mrb[0].mxu0 %v368_v19  ;;  %945 = vmatmul.mubr.bf16.vlgmr.msra.gmra.mrb[0].mxu1 %v351_v20 }
  0xda   : > { %964 = vmatprep.mubr.msk.bf16.mxu0 %vm1320_vm0, %v1319_v0  ;;  %949 = vmatpush3.bf16.msra.mxu0 %v1070_v26 }
  0xdb   : > { %950 = vmatprep.subr.bf16.mxu0 %v1319_v0 }
  0xde   : > { %951 = vmatpush3.bf16.msra.mxu0 %v1071_v27 }
  0xdf   : > { %952 = vmatprep.subr.bf16.mxu0 %v1319_v0 }
  0xe2   : > { %953 = vmatpush3.bf16.msra.mxu0 %v1072_v28 }
  0xe3   : > { %954 = vmatprep.subr.bf16.mxu0 %v1319_v0 }
  0xe6   : > { %955 = vmatpush3.bf16.msra.mxu0 %v1073_v29 }
  0xe7   : > { %956 = vmatprep.subr.bf16.mxu0 %v1319_v0 }
  0xea   : > { %957 = vmatpush3.bf16.msra.mxu0 %v1074_v30 }
  0xeb   : > { %958 = vmatprep.subr.bf16.mxu0 %v1319_v0 }
  0xee   : > { %959 = vmatpush3.bf16.msra.mxu0 %v1075_v31 }
  0xef   : > { %960 = vmatprep.subr.bf16.mxu0 %v1319_v0 }
  0xf2   : > { %961 = vmatpush3.bf16.msra.mxu0 %v1076_v32 }
  0xf3   : > { %962 = vmatprep.subr.bf16.mxu0 %v1319_v0 }
  0xf6   : > { %963 = vmatpush3.bf16.msra.mxu0 %v1077_v33 }
 0x1ac   : > { %v467_v37 = vpop.f32.mrb[0].mxu0  ;;  %v555_v39 = vpop.f32.mrb[0].mxu1 }
 0x1ad   : > { %v926_v40 = vpop.f32.mrb[1].mxu0  ;;  %v556_v41 = vadd.f32 %v555_v39, %v467_v37  ;;  %v946_v42 = vpop.f32.mrb[1].mxu1 }
 0x1ae   : > { %v470_v43 = vpop.f32.mrb[2].mxu0  ;;  %v558_v44 = vpop.f32.mrb[2].mxu1 }
 0x1af   : > { %v927_v45 = vpop.f32.mrb[3].mxu0  ;;  %v565_v46 = vadd.f32 %v564_v38, %v556_v41  ;;  %v947_v47 = vpop.f32.mrb[3].mxu1 }
 0x1b1   : > { %v867_v48 = vmul.f32 -1.442695, %v565_v46  ;;  %v576_v49 = vsub.f32 %v565_v46, %v575_v25 }
 0x1b3   : > { %1078 = vpow2.f32 %v867_v48  ;;  %v868_v56 = vmul.f32 -1.442695, %v576_v49 }
 0x1bd   : > { %v1079_v50 = vpop.eup %1078 }
 0x1be   : > { %v569_v51 = vadd.f32 1.0, %v1079_v50 }
 0x1c0   : > { %1080 = vrcp.f32 %v569_v51 }
 0x1c1   : > { %1082 = vpow2.f32 %v868_v56 }
 0x1ca   : > { %v1081_v52 = vpop.eup %1080 }
 0x1cb   : > { %v583_v53 = vmul.f32 %v1081_v52, %v1635_v18  ;;  %v1083_v57 = vpop.eup %1082 }
 0x1cc   : > { %v580_v59 = vadd.f32 1.0, %v1083_v57 }
 0x1cd   : > { %v584_v54 = vadd.f32 %v583_v53, %v1630_v16 }
 0x1cf   : > { %v585_v55 = vpack.c.bf16 %v584_v54, %v584_v54 }
 0x1d1   : > { %965 = vmatmul.mubr.bf16.vlgmr.msra.gmra.mrb[4].mxu0 %v585_v55 }
 0x2a4   : > { %v688_v58 = vpop.f32.mrb[4].mxu0 }
 0x2a5   : > { %v689_v60 = vadd.f32 %v688_v58, %v605_v35  ;;  %v966_v61 = vpop.f32.mrb[5].mxu0 }
 0x2a6   : > { %v691_v62 = vpop.f32.mrb[6].mxu0 }
 0x2a7   : > { %1084 = vtanh.f32 %v689_v60  ;;  %v967_v63 = vpop.f32.mrb[7].mxu0 }
 0x2a8   : > { %1086 = vrcp.f32 %v580_v59 }
 0x2b1   : > { %v1085_v0 = vpop.eup %1084 }
 0x2b2   : > { %v695_v1 = vsub.f32 %v1085_v0, %v1635_v18  ;;  %v1087_v2 = vpop.eup %1086 }
 0x2b4   : > { %v696_v3 = vmul.f32 %v1087_v2, %v695_v1 }
 0x2b6   : > { %v697_v4 = vadd.f32 %v696_v3, %v1635_v18 }
 0x2b8   : > { %698 = vst [vmem:[%s346_s16] sm:$0xff] %v697_v4 }
 0x2b9   : > { %1245 = shalt.err (!%p1242_p10)
}
 0x2ba   : > { %s1246_s2 = scalar_lea.hbm %s1664_s12, 128  ;;  %s1250_s29 = scalar_lea.hbm %s1714_s6, 256 }
 0x2bb   : > { %p1247_p13 = scmp.ne.s32.totalorder %s1664_s12, %s1246_s2  ;;  %p1251_p9 = scmp.lt.u32.totalorder %s1664_s12, %s1714_s6 }
 0x2bc   : > { %p1252_p3 = scmp.lt.u32.totalorder %s1250_s29, %s1246_s2  ;;  %p1254_p12 = scmp.lt.u32.totalorder %s1246_s2, %s1664_s12 }
 0x2bd   : > { %p1248_p5 = pnand %p1247_p13, %p1739_p1 }
 0x2be   : > { %p1253_p7 = por %p1252_p3, %p1251_p9 }
 0x2bf   : > { %p1249_p11 = pneg %p1248_p5 }
 0x2c0   : > { %p1255_p2 = por %p1254_p12, %p1253_p7 }
 0x2c2   : > { %p1256_p4 = pnand %p1255_p2, %p1249_p11 }
 0x2c4   : > { %1259 = shalt.err (!%p1256_p4)
}
 0x2c5   : > { %984 = dma.vmem_to_hbm [thread:$0]  (%p1739_p1), %s1666_s17, 128, %s1664_s12, %s700_s19  }
 0x2c6 PF: > { %s725_s27 = sand.u32 1, %s1298_s21   ;;  %p1740_p0 = scmp.ne.s32.totalorder %s1723_s28, 0 }
 0x2c7   : > { %p1741_p8 = scmp.ge.s32.totalorder %s1310_s24, 2  ;;  %s726_s11 = scalar_lea.sflag [#allocation4], %s725_s27 }
 0x2c9   : > { %p1004_p6 = pnand %p1741_p8, %p1740_p0 }
 0x2cb   : > { %1293 = dma.done.wait (!%p1004_p6), %s726_s11, 128  }
 0x2cc   : > { %1295 = vsyncadd (!%p1004_p6), %s726_s11, 4294967168  ;;  %p23_p10 = scmp.ge.s32.totalorder %s1497_s18, 4   ;;  %s1742_s21 = smov %s1302_s22 }
 0x2cd   : > { %s1743_s22 = smov %s1306_s23  ;;  %s1744_s23 = smov %s1507_s14 }
 0x2ce   : > { %s1745_s24 = smov %s1497_s18  ;;  %25 = sbr.rel (!%p23_p10) target bundleno = 12 (0xc), region = 114 }
 0x2d5   :  { %731 = vsyncpa [#allocation3], 1 }
 0x2d6   :  { %733 = vsyncpa [#allocation3 + $0x1], 1 }
 0x2d7   :  { %734 = vsyncpa [#allocation6], 1 }
 0x2d8   :  { %736 = vsyncpa [#allocation6 + $0x1], 1 }
 0x2d9   :  { %737 = vsyncpa [#allocation9], 1 }
 0x2da   :  { %738 = vsyncpa [#allocation4], 1 }
 0x2db   :  { %740 = vsyncpa [#allocation4 + $0x1], 1 }

</bundles_post_ra>
